<compile_context>
chip_gen: v6e
topology: v6e:2x2x1
jax: 0.10.0
libtpu: 0.0.40
codegen_flags: <defaults>
</compile_context>

<pallas_src>
import functools

import jax
import jax.numpy as jnp
from jax.experimental import pallas as pl
from jax.experimental.pallas import tpu as pltpu


_LANES = 128                          # lane width: stored last dim is 128
_TARGET_TILE_BYTES = 4 * 1024 * 1024  # ~4 MiB per buffer
_MIN_SPLIT_BYTES = 512 * 1024         # above this, force >=2 grid steps (v7x: 2 TCs)
_VMEM_LIMIT_BYTES = 32 * 1024 * 1024  # combine path worst case: 3 arrays x 2 bufs x 4 MiB = 24 MiB


# ----------------------------- Pallas kernels ------------------------------

def _rezero_fused_kernel(g_ref, x_ref, o_ref, *, fn):
    """out = x + g * fn(x), fused on one lane-dense VMEM tile.

    g_ref : (1, 1) f32 scalar gate in SMEM
    x_ref : (tile_rows, 128) tile in VMEM, native dtype
    o_ref : (tile_rows, 128) tile in VMEM, native dtype
    """
    x = x_ref[...].astype(jnp.float32)       # in-VMEM upcast (free on VPU)
    g = g_ref[0, 0]
    y = fn(x).astype(jnp.float32)
    o_ref[...] = (x + g * y).astype(o_ref.dtype)


def _rezero_combine_kernel(g_ref, x_ref, y_ref, o_ref):
    """out = x + g * y  (gate-only path for a precomputed fn(x))."""
    x = x_ref[...].astype(jnp.float32)
    y = y_ref[...].astype(jnp.float32)
    o_ref[...] = (x + g_ref[0, 0] * y).astype(o_ref.dtype)


# ----------------------------- layout helpers ------------------------------

def _round_up(n, m):
    return ((n + m - 1) // m) * m


def _slab_geometry(total_elems, dtype):
    """Return (rows, tile_rows, grid) for a lane-dense (rows, 128) slab."""
    itemsize = jnp.dtype(dtype).itemsize
    granule = max(8, 32 // itemsize)          # sublane granule: f32 8, bf16 16, int8 32
    rows = pl.cdiv(total_elems, _LANES)
    slab_bytes = rows * _LANES * itemsize
    max_tile_rows = max(
        granule,
        (_TARGET_TILE_BYTES // (_LANES * itemsize)) // granule * granule)

    if slab_bytes <= _MIN_SPLIT_BYTES and rows <= max_tile_rows:
        # Tiny/small tensor: a single full-array block (no (8,128) divisibility
        # requirement, no padded rows, no per-step overhead).
        return rows, rows, 1

    # Mid/large tensor: >=2 steps so both v7x TensorCores get work; balance the
    # tile so the ragged last block wastes at most one sublane granule.
    n_tiles = max(2, pl.cdiv(rows, max_tile_rows))
    tile_rows = min(max_tile_rows, _round_up(pl.cdiv(rows, n_tiles), granule))
    grid = pl.cdiv(rows, tile_rows)
    return rows, tile_rows, grid


def _to_slab(x, rows):
    """Flatten to a lane-dense (rows, 128) slab in the NATIVE dtype.

    Only pads (with a tail-only concatenate) when total % 128 != 0; padded
    elements flow through fn but are never written back to the caller.
    """
    xf = jnp.ravel(x)
    padded = rows * _LANES
    if padded != xf.shape[0]:
        xf = jnp.concatenate([xf, jnp.zeros((padded - xf.shape[0],), xf.dtype)])
    return xf.reshape(rows, _LANES)


def _from_slab(slab, shape, total_elems):
    flat = slab.reshape(-1)
    if flat.shape[0] != total_elems:
        flat = flat[:total_elems]
    return flat.reshape(shape)


# ----------------------------- wrappers ------------------------------------

def rezero_apply(x, g, fn):
    """Rezero forward with fn fused inside the kernel.

    `fn` must be tile-local (elementwise / layout-agnostic) so it can be traced
    on the flattened lane-dense tile.  For non-tile-local fn, compute y = fn(x)
    separately and use rezero_combine(x, y, g).
    """
    total = x.size
    rows, tile_rows, grid = _slab_geometry(total, x.dtype)
    x2 = _to_slab(x, rows)
    g2 = jnp.asarray(g, jnp.float32).reshape(1, 1)

    out = pl.pallas_call(
        functools.partial(_rezero_fused_kernel, fn=fn),
        out_shape=jax.ShapeDtypeStruct((rows, _LANES), x.dtype),
        grid=(grid,),
        in_specs=[
            pl.BlockSpec(memory_space=pltpu.MemorySpace.SMEM),     # g: scalar path
            pl.BlockSpec((tile_rows, _LANES), lambda i: (i, 0)),
        ],
        out_specs=pl.BlockSpec((tile_rows, _LANES), lambda i: (i, 0)),
        compiler_params=pltpu.CompilerParams(
            dimension_semantics=("parallel",),
            vmem_limit_bytes=_VMEM_LIMIT_BYTES),
    )(g2, x2)

    return _from_slab(out, x.shape, total)


def rezero_combine(x, y, g):
    """Rezero gate for a precomputed y = fn(x):  x + g * y.

    Note: when you control the producer of y, fuse this gate into its epilogue
    instead — the standalone launch streams an irreducible 3x the tensor bytes.
    """
    if x.shape != y.shape:
        raise ValueError("fn(x) must have the same shape as x for Rezero")
    total = x.size
    rows, tile_rows, grid = _slab_geometry(total, x.dtype)
    x2 = _to_slab(x, rows)
    y2 = _to_slab(y.astype(x.dtype), rows)
    g2 = jnp.asarray(g, jnp.float32).reshape(1, 1)

    out = pl.pallas_call(
        _rezero_combine_kernel,
        out_shape=jax.ShapeDtypeStruct((rows, _LANES), x.dtype),
        grid=(grid,),
        in_specs=[
            pl.BlockSpec(memory_space=pltpu.MemorySpace.SMEM),
            pl.BlockSpec((tile_rows, _LANES), lambda i: (i, 0)),
            pl.BlockSpec((tile_rows, _LANES), lambda i: (i, 0)),
        ],
        out_specs=pl.BlockSpec((tile_rows, _LANES), lambda i: (i, 0)),
        compiler_params=pltpu.CompilerParams(
            dimension_semantics=("parallel",),
            vmem_limit_bytes=_VMEM_LIMIT_BYTES),
    )(g2, x2, y2)

    return _from_slab(out, x.shape, total)


# ----------------------------- example fn (Mish) ---------------------------

def _mish_kernel_fn(y):
    """Mish = y * tanh(softplus(y)) with one EUP exp + one EUP approx recip.

    tanh(softplus(y)) = ((1+e)^2 - 1)/((1+e)^2 + 1) = e(e+2) / (e(e+2) + 2).
    No input clamp: for y > 20 the where() selects y directly, so the
    (possibly inf/NaN) discarded branch is never used.  Approx reciprocal
    gives ~1e-3-level relative error on this path (documented; tolerance 5e-3).
    """
    e = jnp.exp(y)
    n = e * (e + 2.0)
    m = y * n * pl.reciprocal(n + 2.0, approx=True)
    return jnp.where(y > 20.0, y, m)


def _mish_ref(x):
    sp = jnp.where(x > 20.0, x, jnp.log1p(jnp.exp(jnp.minimum(x, 20.0))))
    return x * jnp.tanh(sp)


# ---------------------------------- main ------------------------------------

if __name__ == "__main__":
    key = jax.random.PRNGKey(0)
    kx, _ = jax.random.split(key)

    x = jax.random.normal(kx, (2, 4, 16, 16), jnp.float32)
    # nn.Parameter(torch.zeros(1)) -> scalar gate; use a nonzero value so the
    # check exercises the full x + g*fn(x) path (g=0 would only test the skip).
    g = jnp.array([0.1], jnp.float32)

    # Fused path: fn (Mish) traced inside the Pallas kernel.
    fused = jax.jit(functools.partial(rezero_apply, fn=_mish_kernel_fn))
    out = jax.block_until_ready(fused(x, g))
    ref = x + g[0] * _mish_ref(x)
    assert out.shape == x.shape and out.dtype == x.dtype
    err = float(jnp.max(jnp.abs(out - ref)))
    assert err < 5e-3, f"fused rezero mismatch vs reference: {err}"

    # Gate-only path: fn(x) computed outside (covers non-tile-local fn).
    # TODO(synk): an arbitrary nn.Module `fn` (e.g. attention) needs its own
    # kernel; here its output is combined with the rezero gate kernel.
    y = _mish_ref(x)
    out2 = jax.block_until_ready(jax.jit(rezero_combine)(x, y, g))
    err2 = float(jnp.max(jnp.abs(out2 - ref)))
    assert err2 < 1e-5, f"combine rezero mismatch vs reference: {err2}"

    print("KERNEL_OK")
</pallas_src>

<mosaic_0001>
module attributes {stable_mosaic.version = 11 : i64} {
  func.func @_rezero_fused_kernel(%arg0: i32, %arg1: memref<1x1xf32, #tpu.memory_space<smem>>, %arg2: memref<16x128xf32, #tpu.memory_space<vmem>>, %arg3: memref<16x128xf32, #tpu.memory_space<vmem>>) attributes {dimension_semantics = [#tpu.dimension_semantics<parallel>], iteration_bounds = array<i64: 1>, scalar_prefetch = 0 : i64, scratch_operands = 0 : i64, tpu.core_type = #tpu.core_type<tc>, window_params = [{transform_indices = @transform_0, window_bounds = array<i64: 1, 1>}, {transform_indices = @transform_1, window_bounds = array<i64: 16, 128>}, {transform_indices = @transform_2, window_bounds = array<i64: 16, 128>}]} {
    %c0 = arith.constant 0 : index
    %c0_0 = arith.constant 0 : index
    %0 = vector.load %arg2[%c0, %c0_0] : memref<16x128xf32, #tpu.memory_space<vmem>>, vector<16x128xf32>
    %c0_1 = arith.constant 0 : index
    %c0_2 = arith.constant 0 : index
    %1 = memref.load %arg1[%c0_1, %c0_2] : memref<1x1xf32, #tpu.memory_space<smem>>
    %2 = math.exp %0 : vector<16x128xf32>
    %cst = arith.constant 2.000000e+00 : f32
    %3 = vector.broadcast %cst : f32 to vector<16x128xf32>
    %4 = arith.addf %2, %3 : vector<16x128xf32>
    %5 = arith.mulf %2, %4 : vector<16x128xf32>
    %6 = arith.mulf %0, %5 : vector<16x128xf32>
    %cst_3 = arith.constant 2.000000e+00 : f32
    %7 = vector.broadcast %cst_3 : f32 to vector<16x128xf32>
    %8 = arith.addf %5, %7 : vector<16x128xf32>
    %9 = tpu.reciprocal %8 {approx = true} : vector<16x128xf32> -> vector<16x128xf32>
    %10 = arith.mulf %6, %9 : vector<16x128xf32>
    %cst_4 = arith.constant 2.000000e+01 : f32
    %11 = vector.broadcast %cst_4 : f32 to vector<16x128xf32>
    %12 = arith.cmpf ogt, %0, %11 : vector<16x128xf32>
    %13 = arith.select %12, %0, %10 : vector<16x128xi1>, vector<16x128xf32>
    %14 = vector.broadcast %1 : f32 to vector<16x128xf32>
    %15 = arith.mulf %14, %13 : vector<16x128xf32>
    %16 = arith.addf %0, %15 : vector<16x128xf32>
    %c0_5 = arith.constant 0 : index
    %c0_6 = arith.constant 0 : index
    %17 = vector.load %arg3[%c0_5, %c0_6] : memref<16x128xf32, #tpu.memory_space<vmem>>, vector<16x128xf32>
    tpu.vector_store %arg3[%c0_5, %c0_6], %16 {strides = array<i32>} : memref<16x128xf32, #tpu.memory_space<vmem>>, vector<16x128xf32>,
    return
  }
  func.func @transform_0(%arg0: i32) -> (i32, i32) {
    %c0_i32 = arith.constant 0 : i32
    %c0_i32_0 = arith.constant 0 : i32
    %c0_i32_1 = arith.constant 0 : i32
    return %c0_i32, %c0_i32_0 : i32, i32
  }
  func.func @transform_1(%arg0: i32) -> (i32, i32) {
    %c0_i32 = arith.constant 0 : i32
    %c0_i32_0 = arith.constant 0 : i32
    return %arg0, %c0_i32 : i32, i32
  }
  func.func @transform_2(%arg0: i32) -> (i32, i32) {
    %c0_i32 = arith.constant 0 : i32
    %c0_i32_0 = arith.constant 0 : i32
    return %arg0, %c0_i32 : i32, i32
  }
}

</mosaic_0001>

<bundles_post_ra>
// kernel: rezero_apply.1
= control target key start
LH: loop header
LB: loop body
LE: loop exit
PB: predicated region body
PF: predicated region fallthrough
CT: control target
= control target key end

     0   :  { %s84_s1 = inlined_call_operand.vmem [shape: f32[16,128], index: 1, kind: input, shape index: {}]   ;;  %s85_s0 = inlined_call_operand.<no memory space> [shape: f32[1,1], index: 0, kind: input, shape index: {}]   ;;  %s86_s2 = inlined_call_operand.vmem [shape: f32[16,128], index: 2, kind: output, shape index: {}]  }
   0x1   :  { %v12_v0 = vld [vmem:[%s84_s1] sm:$0xff]  ;;  %v13_v1 = vld [vmem:[%s84_s1 + $0x8] sm:$0xff]  ;;  %v35_v17 = vstv %s85_s0 }
   0x2   :  { %v15_v2 = vmul.f32 1.442695, %v12_v0  ;;  %v17_v3 = vmul.f32 1.442695, %v13_v1  ;;  %vm31_vm0 = vcmp.gt.f32.partialorder %v12_v0, 20.0  ;;  %vm32_vm1 = vcmp.gt.f32.partialorder %v13_v1, 20.0 }
   0x4   :  { %46 = vpow2.f32 %v15_v2 }
   0x5   :  { %48 = vpow2.f32 %v17_v3 }
  0x11   :  { %v47_v4 = vpop.eup %46 }
  0x12   :  { %v49_v5 = vpop.eup %48  ;;  %v19_v6 = vadd.f32 2.0, %v47_v4 }
  0x13   :  { %v20_v7 = vadd.f32 2.0, %v49_v5 }
  0x14   :  { %v21_v8 = vmul.f32 %v47_v4, %v19_v6 }
  0x15   :  { %v22_v9 = vmul.f32 %v49_v5, %v20_v7 }
  0x16   :  { %v25_v10 = vadd.f32 2.0, %v21_v8  ;;  %v23_v12 = vmul.f32 %v21_v8, %v12_v0 }
  0x17   :  { %v26_v11 = vadd.f32 2.0, %v22_v9  ;;  %v24_v13 = vmul.f32 %v22_v9, %v13_v1 }
  0x18   :  { %50 = vrcp.f32 %v25_v10 }
  0x19   :  { %52 = vrcp.f32 %v26_v11 }
  0x25   :  { %v51_v14 = vpop.eup %50 }
  0x26   :  { %v53_v15 = vpop.eup %52  ;;  %v29_v16 = vmul.f32 %v51_v14, %v23_v12 }
  0x27   :  { %v30_v18 = vmul.f32 %v53_v15, %v24_v13 }
  0x28   :  { %v33_v19 = vsel %vm31_vm0, %v12_v0, %v29_v16 }
  0x29   :  { %v36_v20 = vmul.f32 %v35_v17, %v33_v19  ;;  %v34_v21 = vsel %vm32_vm1, %v13_v1, %v30_v18 }
  0x2a   :  { %v37_v22 = vmul.f32 %v35_v17, %v34_v21 }
  0x2b   :  { %v38_v23 = vadd.f32 %v36_v20, %v12_v0 }
  0x2c   :  { %v39_v24 = vadd.f32 %v37_v22, %v13_v1 }
  0x2d   :  { %40 = vst [vmem:[%s86_s2] sm:$0xff] %v38_v23 }
  0x2e   :  { %41 = vst [vmem:[%s86_s2 + $0x8] sm:$0xff] %v39_v24 }

</bundles_post_ra>
